<compile_context>
chip_gen: v5e
topology: v5e:2x2
jax: 0.10.0
libtpu: 0.0.40
codegen_flags: <defaults>
</compile_context>

<pallas_src>
import jax
import jax.numpy as jnp
from jax.experimental import pallas as pl
from jax.experimental.pallas import tpu as pltpu


_UNROLL_MAX_T = 32  # static Python unroll of the time loop up to this length


def _lstm_step(gates, c_prev, H):
    """Gate math with 3 EUP pushes: sigmoid(full 4H width), tanh(g), tanh(c)."""
    sig = jax.nn.sigmoid(gates)                 # one full-width EUP op
    i_g = sig[:, 0 * H:1 * H]
    f_g = sig[:, 1 * H:2 * H]
    o_g = sig[:, 3 * H:4 * H]
    g_g = jnp.tanh(gates[:, 2 * H:3 * H])
    c = f_g * c_prev + i_g * g_g
    h = o_g * jnp.tanh(c)
    return h, c


def _decoder_kernel_unrolled(z_ref, wl_ref, bl_ref, wih_ref, whh_ref, bg_ref,
                             out_ref, cn_ref, gx_scr):
    """Time loop statically unrolled; lane-dense chunked output stores.

    z_ref   : (T*Bp, Z_in)  time-major flattened input (batch padded to Bp)
    wl_ref  : (Z_in, H)     pre-transposed Linear weight
    bl_ref  : (1, H)        Linear bias
    wih_ref : (H, 4H)       pre-transposed LSTM input weights
    whh_ref : (H, 4H)       pre-transposed LSTM recurrent weights (f32)
    bg_ref  : (1, 4H)       folded bias (b_ih + b_hh)
    out_ref : (Bp, T*H)     batch-first, lane-packed LSTM output
    cn_ref  : (Bp, H)       final cell state
    gx_scr  : (T, Bp, 4H)   VMEM scratch: precomputed gate inputs
    """
    T, Bp, H4 = gx_scr.shape
    H = H4 // 4
    mm_dtype = wl_ref.dtype  # matmul input dtype for the hoisted matmuls

    # Hoisted non-recurrent matmuls over all (t, b) rows at once.
    lin = jnp.dot(z_ref[...], wl_ref[...],
                  preferred_element_type=jnp.float32) + bl_ref[...]
    gx = jnp.dot(lin.astype(mm_dtype), wih_ref[...],
                 preferred_element_type=jnp.float32) + bg_ref[...]   # (T*Bp, 4H)
    gx_scr[...] = gx.reshape(T, Bp, H4)   # park in VMEM; aligned per-step reads

    whh = whh_ref[...]                    # f32 recurrence weights

    h = jnp.zeros((Bp, H), jnp.float32)
    c = jnp.zeros((Bp, H), jnp.float32)

    # Store h in chunks of `chunk` timesteps so each store is 128-lane dense.
    chunk = (128 // H) if (H < 128 and 128 % H == 0) else 1
    pending = []

    for t in range(T):
        if t == 0:
            gates = gx_scr[0]             # h0 == 0 -> skip the recurrence matmul
        else:
            gates = gx_scr[t] + jnp.dot(h, whh,
                                        preferred_element_type=jnp.float32)
        h, c = _lstm_step(gates, c, H)
        pending.append(h)
        if len(pending) == chunk or t == T - 1:
            start = (t + 1 - len(pending)) * H
            block = pending[0] if len(pending) == 1 else jnp.concatenate(
                pending, axis=-1)
            out_ref[:, start:start + block.shape[-1]] = block.astype(out_ref.dtype)
            pending = []

    cn_ref[...] = c.astype(cn_ref.dtype)                 # written exactly once


def _decoder_kernel_looped(z_ref, wl_ref, bl_ref, wih_ref, whh_ref, bg_ref,
                           out_ref, cn_ref, gx_scr):
    """Fallback for long sequences: time-major layout + lax.fori_loop.

    out_ref : (T, Bp, H)   time-major output (sublane-aligned per-step stores)
    gx_scr  : (T, Bp, 4H)  VMEM scratch with precomputed gate inputs
    """
    T, Bp, H4 = gx_scr.shape
    H = H4 // 4
    mm_dtype = wl_ref.dtype

    lin = jnp.dot(z_ref[...], wl_ref[...],
                  preferred_element_type=jnp.float32) + bl_ref[...]
    gx_scr[...] = (jnp.dot(lin.astype(mm_dtype), wih_ref[...],
                           preferred_element_type=jnp.float32)
                   + bg_ref[...]).reshape(T, Bp, H4)
    whh = whh_ref[...]                    # f32 recurrence weights

    def step(t, carry):
        h, c = carry
        gates = gx_scr[t] + jnp.dot(h, whh, preferred_element_type=jnp.float32)
        h, c = _lstm_step(gates, c, H)
        out_ref[t] = h.astype(out_ref.dtype)
        return h, c

    h0 = jnp.zeros((Bp, H), jnp.float32)
    c0 = jnp.zeros((Bp, H), jnp.float32)
    _, c_last = jax.lax.fori_loop(0, T, step, (h0, c0))
    cn_ref[...] = c_last.astype(cn_ref.dtype)


def upper_level_decoder(z, params, *, use_bf16_matmul=False):
    """z: (B, T, Z_in) float32.  Returns (output (B,T,H), (h_n, c_n) each (1,B,H)).

    use_bf16_matmul only affects the two hoisted matmuls (v6e/v7x); the
    recurrence always runs in f32.  Keep False for 1e-5 checks and on v5e.
    """
    B, T, Z_in = z.shape
    H = params["w_lin"].shape[0]
    f32 = jnp.float32
    mm_dtype = jnp.bfloat16 if use_bf16_matmul else f32
    Bp = ((B + 7) // 8) * 8                                  # sublane-aligned batch

    # Pre-transpose weights and fold biases once in the wrapper.
    wl_t = params["w_lin"].T.astype(mm_dtype)                # (Z_in, H)
    wih_t = params["w_ih"].T.astype(mm_dtype)                # (H, 4H)
    whh_t = params["w_hh"].T.astype(f32)                     # (H, 4H), f32 recurrence
    b_lin = params["b_lin"].reshape(1, H).astype(f32)        # (1, H)
    b_gate = (params["b_ih"] + params["b_hh"]).reshape(1, 4 * H).astype(f32)

    # Time-major input, batch padded to Bp with inert zero rows.
    z_tm = jnp.transpose(z, (1, 0, 2))                       # (T, B, Z_in)
    if Bp != B:
        z_tm = jnp.pad(z_tm, ((0, 0), (0, Bp - B), (0, 0)))
    z2d = z_tm.reshape(T * Bp, Z_in).astype(mm_dtype)

    in_specs = [
        pl.BlockSpec((T * Bp, Z_in), lambda i: (0, 0)),      # z (time-major)
        pl.BlockSpec((Z_in, H), lambda i: (0, 0)),           # W_lin^T
        pl.BlockSpec((1, H), lambda i: (0, 0)),              # b_lin
        pl.BlockSpec((H, 4 * H), lambda i: (0, 0)),          # W_ih^T
        pl.BlockSpec((H, 4 * H), lambda i: (0, 0)),          # W_hh^T
        pl.BlockSpec((1, 4 * H), lambda i: (0, 0)),          # b_ih + b_hh
    ]
    cparams = pltpu.CompilerParams(dimension_semantics=("arbitrary",))
    scratch = [pltpu.VMEM((T, Bp, 4 * H), jnp.float32)]

    if T <= _UNROLL_MAX_T:
        out_packed, c_last = pl.pallas_call(
            _decoder_kernel_unrolled,
            out_shape=(
                jax.ShapeDtypeStruct((Bp, T * H), z.dtype),
                jax.ShapeDtypeStruct((Bp, H), z.dtype),
            ),
            grid_spec=pltpu.PrefetchScalarGridSpec(
                num_scalar_prefetch=0,
                grid=(1,),
                in_specs=in_specs,
                out_specs=(
                    pl.BlockSpec((Bp, T * H), lambda i: (0, 0)),
                    pl.BlockSpec((Bp, H), lambda i: (0, 0)),
                ),
                scratch_shapes=scratch,
            ),
            compiler_params=cparams,
        )(z2d, wl_t, b_lin, wih_t, whh_t, b_gate)
        out = out_packed[:B].reshape(B, T, H)                # free reshape
    else:
        out_tm, c_last = pl.pallas_call(
            _decoder_kernel_looped,
            out_shape=(
                jax.ShapeDtypeStruct((T, Bp, H), z.dtype),
                jax.ShapeDtypeStruct((Bp, H), z.dtype),
            ),
            grid_spec=pltpu.PrefetchScalarGridSpec(
                num_scalar_prefetch=0,
                grid=(1,),
                in_specs=in_specs,
                out_specs=(
                    pl.BlockSpec((T, Bp, H), lambda i: (0, 0, 0)),
                    pl.BlockSpec((Bp, H), lambda i: (0, 0)),
                ),
                scratch_shapes=scratch,
            ),
            compiler_params=cparams,
        )(z2d, wl_t, b_lin, wih_t, whh_t, b_gate)
        out = jnp.transpose(out_tm[:, :B, :], (1, 0, 2))

    h_n = out[:, -1, :][None]                                # (1, B, H)
    c_n = c_last[:B][None].astype(z.dtype)                   # (1, B, H)
    return out, (h_n, c_n)


def init_params(key, Z_in, H):
    """Deterministic init mimicking PyTorch's default uniform(-k, k)."""
    k_lin = 1.0 / jnp.sqrt(Z_in)
    k_lstm = 1.0 / jnp.sqrt(H)
    ks = jax.random.split(key, 6)
    return {
        "w_lin": jax.random.uniform(ks[0], (H, Z_in), jnp.float32, -k_lin, k_lin),
        "b_lin": jax.random.uniform(ks[1], (1, H), jnp.float32, -k_lin, k_lin),
        "w_ih":  jax.random.uniform(ks[2], (4 * H, H), jnp.float32, -k_lstm, k_lstm),
        "b_ih":  jax.random.uniform(ks[3], (1, 4 * H), jnp.float32, -k_lstm, k_lstm),
        "w_hh":  jax.random.uniform(ks[4], (4 * H, H), jnp.float32, -k_lstm, k_lstm),
        "b_hh":  jax.random.uniform(ks[5], (1, 4 * H), jnp.float32, -k_lstm, k_lstm),
    }


def reference(z, p):
    """Pure-JAX reference (PyTorch LSTM semantics, gate order i, f, g, o)."""
    lin = z @ p["w_lin"].T + p["b_lin"][0]            # (B, T, H)
    B, T, _ = z.shape
    H = p["w_lin"].shape[0]

    def step(carry, x_t):
        h, c = carry
        gates = (x_t @ p["w_ih"].T + p["b_ih"][0]
                 + h @ p["w_hh"].T + p["b_hh"][0])
        i_g, f_g, g_g, o_g = jnp.split(gates, 4, axis=-1)
        c = jax.nn.sigmoid(f_g) * c + jax.nn.sigmoid(i_g) * jnp.tanh(g_g)
        h = jax.nn.sigmoid(o_g) * jnp.tanh(c)
        return (h, c), h

    h0 = jnp.zeros((B, H), jnp.float32)
    c0 = jnp.zeros((B, H), jnp.float32)
    (hT, cT), ys = jax.lax.scan(step, (h0, c0), jnp.transpose(lin, (1, 0, 2)))
    return jnp.transpose(ys, (1, 0, 2)), (hT[None], cT[None])


def _check(z, params, tag):
    out, (h_n, c_n) = upper_level_decoder(z, params)
    jax.block_until_ready((out, h_n, c_n))
    ref_out, (ref_h, ref_c) = reference(z, params)
    B, T, _ = z.shape
    H = params["w_lin"].shape[0]
    assert out.shape == (B, T, H) and h_n.shape == (1, B, H) and c_n.shape == (1, B, H)
    assert jnp.allclose(out, ref_out, atol=1e-5), f"{tag}: output mismatch"
    assert jnp.allclose(h_n, ref_h, atol=1e-5), f"{tag}: h_n mismatch"
    assert jnp.allclose(c_n, ref_c, atol=1e-5), f"{tag}: c_n mismatch"


if __name__ == "__main__":
    B, Z_in, H = 2, 16, 32
    key = jax.random.PRNGKey(0)
    k_z1, k_z2, k_p = jax.random.split(key, 3)
    params = init_params(k_p, Z_in, H)

    # Unrolled path (T <= _UNROLL_MAX_T).
    z_short = jax.random.normal(k_z1, (B, 8, Z_in), jnp.float32)
    _check(z_short, params, "unrolled")

    # Looped fallback path (T > _UNROLL_MAX_T).
    z_long = jax.random.normal(k_z2, (B, 40, Z_in), jnp.float32)
    _check(z_long, params, "looped")

    print("KERNEL_OK")
</pallas_src>

<mosaic_0001>
module attributes {stable_mosaic.version = 11 : i64} {
  func.func @_decoder_kernel_unrolled(%arg0: i32, %arg1: memref<64x16xf32, #tpu.memory_space<vmem>>, %arg2: memref<16x32xf32, #tpu.memory_space<vmem>>, %arg3: memref<1x32xf32, #tpu.memory_space<vmem>>, %arg4: memref<32x128xf32, #tpu.memory_space<vmem>>, %arg5: memref<32x128xf32, #tpu.memory_space<vmem>>, %arg6: memref<1x128xf32, #tpu.memory_space<vmem>>, %arg7: memref<8x256xf32, #tpu.memory_space<vmem>>, %arg8: memref<8x32xf32, #tpu.memory_space<vmem>>, %arg9: memref<8x8x128xf32, #tpu.memory_space<vmem>>) attributes {dimension_semantics = [#tpu.dimension_semantics<arbitrary>], iteration_bounds = array<i64: 1>, scalar_prefetch = 0 : i64, scratch_operands = 1 : i64, tpu.core_type = #tpu.core_type<tc>, window_params = [{pipeline_mode = #tpu.pipeline_mode<synchronous>, transform_indices = @transform_0, window_bounds = array<i64: 64, 16>}, {pipeline_mode = #tpu.pipeline_mode<synchronous>, transform_indices = @transform_1, window_bounds = array<i64: 16, 32>}, {pipeline_mode = #tpu.pipeline_mode<synchronous>, transform_indices = @transform_2, window_bounds = array<i64: 1, 32>}, {pipeline_mode = #tpu.pipeline_mode<synchronous>, transform_indices = @transform_3, window_bounds = array<i64: 32, 128>}, {pipeline_mode = #tpu.pipeline_mode<synchronous>, transform_indices = @transform_4, window_bounds = array<i64: 32, 128>}, {pipeline_mode = #tpu.pipeline_mode<synchronous>, transform_indices = @transform_5, window_bounds = array<i64: 1, 128>}, {pipeline_mode = #tpu.pipeline_mode<synchronous>, transform_indices = @transform_6, window_bounds = array<i64: 8, 256>}, {pipeline_mode = #tpu.pipeline_mode<synchronous>, transform_indices = @transform_7, window_bounds = array<i64: 8, 32>}]} {
    %c0 = arith.constant 0 : index
    %c0_0 = arith.constant 0 : index
    %0 = vector.load %arg1[%c0, %c0_0] : memref<64x16xf32, #tpu.memory_space<vmem>>, vector<64x16xf32>
    %c0_1 = arith.constant 0 : index
    %c0_2 = arith.constant 0 : index
    %1 = vector.load %arg2[%c0_1, %c0_2] : memref<16x32xf32, #tpu.memory_space<vmem>>, vector<16x32xf32>
    %cst = arith.constant dense<0.000000e+00> : vector<64x32xf32>
    %2 = tpu.matmul %0, %1, %cst {dimension_numbers = #tpu.dot_dimension_numbers<[1], [0], [0], [1], [0, 0, 1, 1], [], []>} : vector<64x16xf32>, vector<16x32xf32>, vector<64x32xf32> -> vector<64x32xf32>
    %c0_3 = arith.constant 0 : index
    %c0_4 = arith.constant 0 : index
    %3 = vector.load %arg3[%c0_3, %c0_4] : memref<1x32xf32, #tpu.memory_space<vmem>>, vector<1x32xf32>
    %4 = vector.broadcast %3 : vector<1x32xf32> to vector<64x32xf32>
    %5 = arith.addf %2, %4 : vector<64x32xf32>
    %c0_5 = arith.constant 0 : index
    %c0_6 = arith.constant 0 : index
    %6 = vector.load %arg4[%c0_5, %c0_6] : memref<32x128xf32, #tpu.memory_space<vmem>>, vector<32x128xf32>
    %cst_7 = arith.constant dense<0.000000e+00> : vector<64x128xf32>
    %7 = tpu.matmul %5, %6, %cst_7 {dimension_numbers = #tpu.dot_dimension_numbers<[1], [0], [0], [1], [0, 0, 1, 1], [], []>} : vector<64x32xf32>, vector<32x128xf32>, vector<64x128xf32> -> vector<64x128xf32>
    %c0_8 = arith.constant 0 : index
    %c0_9 = arith.constant 0 : index
    %8 = vector.load %arg6[%c0_8, %c0_9] : memref<1x128xf32, #tpu.memory_space<vmem>>, vector<1x128xf32>
    %9 = vector.broadcast %8 : vector<1x128xf32> to vector<64x128xf32>
    %10 = arith.addf %7, %9 : vector<64x128xf32>
    %11 = vector.shape_cast %10 : vector<64x128xf32> to vector<8x8x128xf32>
    %c0_10 = arith.constant 0 : index
    %c0_11 = arith.constant 0 : index
    %c0_12 = arith.constant 0 : index
    %12 = vector.load %arg9[%c0_10, %c0_11, %c0_12] : memref<8x8x128xf32, #tpu.memory_space<vmem>>, vector<8x8x128xf32>
    tpu.vector_store %arg9[%c0_10, %c0_11, %c0_12], %11 {strides = array<i32>} : memref<8x8x128xf32, #tpu.memory_space<vmem>>, vector<8x8x128xf32>,
    %c0_13 = arith.constant 0 : index
    %c0_14 = arith.constant 0 : index
    %13 = vector.load %arg5[%c0_13, %c0_14] : memref<32x128xf32, #tpu.memory_space<vmem>>, vector<32x128xf32>
    %cst_15 = arith.constant 0.000000e+00 : f32
    %14 = vector.broadcast %cst_15 : f32 to vector<8x32xf32>
    %c0_16 = arith.constant 0 : index
    %c0_17 = arith.constant 0 : index
    %c0_18 = arith.constant 0 : index
    %15 = vector.load %arg9[%c0_16, %c0_17, %c0_18] : memref<8x8x128xf32, #tpu.memory_space<vmem>>, vector<1x8x128xf32>
    %16 = vector.shape_cast %15 : vector<1x8x128xf32> to vector<8x128xf32>
    %17 = arith.negf %16 : vector<8x128xf32>
    %18 = math.exp %17 : vector<8x128xf32>
    %cst_19 = arith.constant 1.000000e+00 : f32
    %19 = vector.broadcast %cst_19 : f32 to vector<8x128xf32>
    %20 = arith.addf %19, %18 : vector<8x128xf32>
    %21 = arith.divf %19, %20 : vector<8x128xf32>
    %22 = vector.extract_strided_slice %21 {offsets = [0, 0], sizes = [8, 32], strides = [1, 1]} : vector<8x128xf32> to vector<8x32xf32>
    %23 = vector.extract_strided_slice %21 {offsets = [0, 32], sizes = [8, 32], strides = [1, 1]} : vector<8x128xf32> to vector<8x32xf32>
    %24 = vector.extract_strided_slice %21 {offsets = [0, 96], sizes = [8, 32], strides = [1, 1]} : vector<8x128xf32> to vector<8x32xf32>
    %25 = vector.extract_strided_slice %16 {offsets = [0, 64], sizes = [8, 32], strides = [1, 1]} : vector<8x128xf32> to vector<8x32xf32>
    %26 = math.tanh %25 : vector<8x32xf32>
    %27 = arith.mulf %23, %14 : vector<8x32xf32>
    %28 = arith.mulf %22, %26 : vector<8x32xf32>
    %29 = arith.addf %27, %28 : vector<8x32xf32>
    %30 = math.tanh %29 : vector<8x32xf32>
    %31 = arith.mulf %24, %30 : vector<8x32xf32>
    %c1 = arith.constant 1 : index
    %c0_20 = arith.constant 0 : index
    %c0_21 = arith.constant 0 : index
    %32 = vector.load %arg9[%c1, %c0_20, %c0_21] : memref<8x8x128xf32, #tpu.memory_space<vmem>>, vector<1x8x128xf32>
    %33 = vector.shape_cast %32 : vector<1x8x128xf32> to vector<8x128xf32>
    %cst_22 = arith.constant dense<0.000000e+00> : vector<8x128xf32>
    %34 = tpu.matmul %31, %13, %cst_22 {dimension_numbers = #tpu.dot_dimension_numbers<[1], [0], [0], [1], [0, 0, 1, 1], [], []>} : vector<8x32xf32>, vector<32x128xf32>, vector<8x128xf32> -> vector<8x128xf32>
    %35 = arith.addf %33, %34 : vector<8x128xf32>
    %36 = arith.negf %35 : vector<8x128xf32>
    %37 = math.exp %36 : vector<8x128xf32>
    %cst_23 = arith.constant 1.000000e+00 : f32
    %38 = vector.broadcast %cst_23 : f32 to vector<8x128xf32>
    %39 = arith.addf %38, %37 : vector<8x128xf32>
    %40 = arith.divf %38, %39 : vector<8x128xf32>
    %41 = vector.extract_strided_slice %40 {offsets = [0, 0], sizes = [8, 32], strides = [1, 1]} : vector<8x128xf32> to vector<8x32xf32>
    %42 = vector.extract_strided_slice %40 {offsets = [0, 32], sizes = [8, 32], strides = [1, 1]} : vector<8x128xf32> to vector<8x32xf32>
    %43 = vector.extract_strided_slice %40 {offsets = [0, 96], sizes = [8, 32], strides = [1, 1]} : vector<8x128xf32> to vector<8x32xf32>
    %44 = vector.extract_strided_slice %35 {offsets = [0, 64], sizes = [8, 32], strides = [1, 1]} : vector<8x128xf32> to vector<8x32xf32>
    %45 = math.tanh %44 : vector<8x32xf32>
    %46 = arith.mulf %42, %29 : vector<8x32xf32>
    %47 = arith.mulf %41, %45 : vector<8x32xf32>
    %48 = arith.addf %46, %47 : vector<8x32xf32>
    %49 = math.tanh %48 : vector<8x32xf32>
    %50 = arith.mulf %43, %49 : vector<8x32xf32>
    %c2 = arith.constant 2 : index
    %c0_24 = arith.constant 0 : index
    %c0_25 = arith.constant 0 : index
    %51 = vector.load %arg9[%c2, %c0_24, %c0_25] : memref<8x8x128xf32, #tpu.memory_space<vmem>>, vector<1x8x128xf32>
    %52 = vector.shape_cast %51 : vector<1x8x128xf32> to vector<8x128xf32>
    %cst_26 = arith.constant dense<0.000000e+00> : vector<8x128xf32>
    %53 = tpu.matmul %50, %13, %cst_26 {dimension_numbers = #tpu.dot_dimension_numbers<[1], [0], [0], [1], [0, 0, 1, 1], [], []>} : vector<8x32xf32>, vector<32x128xf32>, vector<8x128xf32> -> vector<8x128xf32>
    %54 = arith.addf %52, %53 : vector<8x128xf32>
    %55 = arith.negf %54 : vector<8x128xf32>
    %56 = math.exp %55 : vector<8x128xf32>
    %cst_27 = arith.constant 1.000000e+00 : f32
    %57 = vector.broadcast %cst_27 : f32 to vector<8x128xf32>
    %58 = arith.addf %57, %56 : vector<8x128xf32>
    %59 = arith.divf %57, %58 : vector<8x128xf32>
    %60 = vector.extract_strided_slice %59 {offsets = [0, 0], sizes = [8, 32], strides = [1, 1]} : vector<8x128xf32> to vector<8x32xf32>
    %61 = vector.extract_strided_slice %59 {offsets = [0, 32], sizes = [8, 32], strides = [1, 1]} : vector<8x128xf32> to vector<8x32xf32>
    %62 = vector.extract_strided_slice %59 {offsets = [0, 96], sizes = [8, 32], strides = [1, 1]} : vector<8x128xf32> to vector<8x32xf32>
    %63 = vector.extract_strided_slice %54 {offsets = [0, 64], sizes = [8, 32], strides = [1, 1]} : vector<8x128xf32> to vector<8x32xf32>
    %64 = math.tanh %63 : vector<8x32xf32>
    %65 = arith.mulf %61, %48 : vector<8x32xf32>
    %66 = arith.mulf %60, %64 : vector<8x32xf32>
    %67 = arith.addf %65, %66 : vector<8x32xf32>
    %68 = math.tanh %67 : vector<8x32xf32>
    %69 = arith.mulf %62, %68 : vector<8x32xf32>
    %c3 = arith.constant 3 : index
    %c0_28 = arith.constant 0 : index
    %c0_29 = arith.constant 0 : index
    %70 = vector.load %arg9[%c3, %c0_28, %c0_29] : memref<8x8x128xf32, #tpu.memory_space<vmem>>, vector<1x8x128xf32>
    %71 = vector.shape_cast %70 : vector<1x8x128xf32> to vector<8x128xf32>
    %cst_30 = arith.constant dense<0.000000e+00> : vector<8x128xf32>
    %72 = tpu.matmul %69, %13, %cst_30 {dimension_numbers = #tpu.dot_dimension_numbers<[1], [0], [0], [1], [0, 0, 1, 1], [], []>} : vector<8x32xf32>, vector<32x128xf32>, vector<8x128xf32> -> vector<8x128xf32>
    %73 = arith.addf %71, %72 : vector<8x128xf32>
    %74 = arith.negf %73 : vector<8x128xf32>
    %75 = math.exp %74 : vector<8x128xf32>
    %cst_31 = arith.constant 1.000000e+00 : f32
    %76 = vector.broadcast %cst_31 : f32 to vector<8x128xf32>
    %77 = arith.addf %76, %75 : vector<8x128xf32>
    %78 = arith.divf %76, %77 : vector<8x128xf32>
    %79 = vector.extract_strided_slice %78 {offsets = [0, 0], sizes = [8, 32], strides = [1, 1]} : vector<8x128xf32> to vector<8x32xf32>
    %80 = vector.extract_strided_slice %78 {offsets = [0, 32], sizes = [8, 32], strides = [1, 1]} : vector<8x128xf32> to vector<8x32xf32>
    %81 = vector.extract_strided_slice %78 {offsets = [0, 96], sizes = [8, 32], strides = [1, 1]} : vector<8x128xf32> to vector<8x32xf32>
    %82 = vector.extract_strided_slice %73 {offsets = [0, 64], sizes = [8, 32], strides = [1, 1]} : vector<8x128xf32> to vector<8x32xf32>
    %83 = math.tanh %82 : vector<8x32xf32>
    %84 = arith.mulf %80, %67 : vector<8x32xf32>
    %85 = arith.mulf %79, %83 : vector<8x32xf32>
    %86 = arith.addf %84, %85 : vector<8x32xf32>
    %87 = math.tanh %86 : vector<8x32xf32>
    %88 = arith.mulf %81, %87 : vector<8x32xf32>
    %89 = tpu.concatenate %31, %50, %69, %88 in 1 : vector<8x32xf32>, vector<8x32xf32>, vector<8x32xf32>, vector<8x32xf32> -> vector<8x128xf32>
    %c0_32 = arith.constant 0 : index
    %c0_33 = arith.constant 0 : index
    %90 = vector.load %arg7[%c0_32, %c0_33] : memref<8x256xf32, #tpu.memory_space<vmem>>, vector<8x128xf32>
    tpu.vector_store %arg7[%c0_32, %c0_33], %89 {strides = array<i32>} : memref<8x256xf32, #tpu.memory_space<vmem>>, vector<8x128xf32>,
    %c4 = arith.constant 4 : index
    %c0_34 = arith.constant 0 : index
    %c0_35 = arith.constant 0 : index
    %91 = vector.load %arg9[%c4, %c0_34, %c0_35] : memref<8x8x128xf32, #tpu.memory_space<vmem>>, vector<1x8x128xf32>
    %92 = vector.shape_cast %91 : vector<1x8x128xf32> to vector<8x128xf32>
    %cst_36 = arith.constant dense<0.000000e+00> : vector<8x128xf32>
    %93 = tpu.matmul %88, %13, %cst_36 {dimension_numbers = #tpu.dot_dimension_numbers<[1], [0], [0], [1], [0, 0, 1, 1], [], []>} : vector<8x32xf32>, vector<32x128xf32>, vector<8x128xf32> -> vector<8x128xf32>
    %94 = arith.addf %92, %93 : vector<8x128xf32>
    %95 = arith.negf %94 : vector<8x128xf32>
    %96 = math.exp %95 : vector<8x128xf32>
    %cst_37 = arith.constant 1.000000e+00 : f32
    %97 = vector.broadcast %cst_37 : f32 to vector<8x128xf32>
    %98 = arith.addf %97, %96 : vector<8x128xf32>
    %99 = arith.divf %97, %98 : vector<8x128xf32>
    %100 = vector.extract_strided_slice %99 {offsets = [0, 0], sizes = [8, 32], strides = [1, 1]} : vector<8x128xf32> to vector<8x32xf32>
    %101 = vector.extract_strided_slice %99 {offsets = [0, 32], sizes = [8, 32], strides = [1, 1]} : vector<8x128xf32> to vector<8x32xf32>
    %102 = vector.extract_strided_slice %99 {offsets = [0, 96], sizes = [8, 32], strides = [1, 1]} : vector<8x128xf32> to vector<8x32xf32>
    %103 = vector.extract_strided_slice %94 {offsets = [0, 64], sizes = [8, 32], strides = [1, 1]} : vector<8x128xf32> to vector<8x32xf32>
    %104 = math.tanh %103 : vector<8x32xf32>
    %105 = arith.mulf %101, %86 : vector<8x32xf32>
    %106 = arith.mulf %100, %104 : vector<8x32xf32>
    %107 = arith.addf %105, %106 : vector<8x32xf32>
    %108 = math.tanh %107 : vector<8x32xf32>
    %109 = arith.mulf %102, %108 : vector<8x32xf32>
    %c5 = arith.constant 5 : index
    %c0_38 = arith.constant 0 : index
    %c0_39 = arith.constant 0 : index
    %110 = vector.load %arg9[%c5, %c0_38, %c0_39] : memref<8x8x128xf32, #tpu.memory_space<vmem>>, vector<1x8x128xf32>
    %111 = vector.shape_cast %110 : vector<1x8x128xf32> to vector<8x128xf32>
    %cst_40 = arith.constant dense<0.000000e+00> : vector<8x128xf32>
    %112 = tpu.matmul %109, %13, %cst_40 {dimension_numbers = #tpu.dot_dimension_numbers<[1], [0], [0], [1], [0, 0, 1, 1], [], []>} : vector<8x32xf32>, vector<32x128xf32>, vector<8x128xf32> -> vector<8x128xf32>
    %113 = arith.addf %111, %112 : vector<8x128xf32>
    %114 = arith.negf %113 : vector<8x128xf32>
    %115 = math.exp %114 : vector<8x128xf32>
    %cst_41 = arith.constant 1.000000e+00 : f32
    %116 = vector.broadcast %cst_41 : f32 to vector<8x128xf32>
    %117 = arith.addf %116, %115 : vector<8x128xf32>
    %118 = arith.divf %116, %117 : vector<8x128xf32>
    %119 = vector.extract_strided_slice %118 {offsets = [0, 0], sizes = [8, 32], strides = [1, 1]} : vector<8x128xf32> to vector<8x32xf32>
    %120 = vector.extract_strided_slice %118 {offsets = [0, 32], sizes = [8, 32], strides = [1, 1]} : vector<8x128xf32> to vector<8x32xf32>
    %121 = vector.extract_strided_slice %118 {offsets = [0, 96], sizes = [8, 32], strides = [1, 1]} : vector<8x128xf32> to vector<8x32xf32>
    %122 = vector.extract_strided_slice %113 {offsets = [0, 64], sizes = [8, 32], strides = [1, 1]} : vector<8x128xf32> to vector<8x32xf32>
    %123 = math.tanh %122 : vector<8x32xf32>
    %124 = arith.mulf %120, %107 : vector<8x32xf32>
    %125 = arith.mulf %119, %123 : vector<8x32xf32>
    %126 = arith.addf %124, %125 : vector<8x32xf32>
    %127 = math.tanh %126 : vector<8x32xf32>
    %128 = arith.mulf %121, %127 : vector<8x32xf32>
    %c6 = arith.constant 6 : index
    %c0_42 = arith.constant 0 : index
    %c0_43 = arith.constant 0 : index
    %129 = vector.load %arg9[%c6, %c0_42, %c0_43] : memref<8x8x128xf32, #tpu.memory_space<vmem>>, vector<1x8x128xf32>
    %130 = vector.shape_cast %129 : vector<1x8x128xf32> to vector<8x128xf32>
    %cst_44 = arith.constant dense<0.000000e+00> : vector<8x128xf32>
    %131 = tpu.matmul %128, %13, %cst_44 {dimension_numbers = #tpu.dot_dimension_numbers<[1], [0], [0], [1], [0, 0, 1, 1], [], []>} : vector<8x32xf32>, vector<32x128xf32>, vector<8x128xf32> -> vector<8x128xf32>
    %132 = arith.addf %130, %131 : vector<8x128xf32>
    %133 = arith.negf %132 : vector<8x128xf32>
    %134 = math.exp %133 : vector<8x128xf32>
    %cst_45 = arith.constant 1.000000e+00 : f32
    %135 = vector.broadcast %cst_45 : f32 to vector<8x128xf32>
    %136 = arith.addf %135, %134 : vector<8x128xf32>
    %137 = arith.divf %135, %136 : vector<8x128xf32>
    %138 = vector.extract_strided_slice %137 {offsets = [0, 0], sizes = [8, 32], strides = [1, 1]} : vector<8x128xf32> to vector<8x32xf32>
    %139 = vector.extract_strided_slice %137 {offsets = [0, 32], sizes = [8, 32], strides = [1, 1]} : vector<8x128xf32> to vector<8x32xf32>
    %140 = vector.extract_strided_slice %137 {offsets = [0, 96], sizes = [8, 32], strides = [1, 1]} : vector<8x128xf32> to vector<8x32xf32>
    %141 = vector.extract_strided_slice %132 {offsets = [0, 64], sizes = [8, 32], strides = [1, 1]} : vector<8x128xf32> to vector<8x32xf32>
    %142 = math.tanh %141 : vector<8x32xf32>
    %143 = arith.mulf %139, %126 : vector<8x32xf32>
    %144 = arith.mulf %138, %142 : vector<8x32xf32>
    %145 = arith.addf %143, %144 : vector<8x32xf32>
    %146 = math.tanh %145 : vector<8x32xf32>
    %147 = arith.mulf %140, %146 : vector<8x32xf32>
    %c7 = arith.constant 7 : index
    %c0_46 = arith.constant 0 : index
    %c0_47 = arith.constant 0 : index
    %148 = vector.load %arg9[%c7, %c0_46, %c0_47] : memref<8x8x128xf32, #tpu.memory_space<vmem>>, vector<1x8x128xf32>
    %149 = vector.shape_cast %148 : vector<1x8x128xf32> to vector<8x128xf32>
    %cst_48 = arith.constant dense<0.000000e+00> : vector<8x128xf32>
    %150 = tpu.matmul %147, %13, %cst_48 {dimension_numbers = #tpu.dot_dimension_numbers<[1], [0], [0], [1], [0, 0, 1, 1], [], []>} : vector<8x32xf32>, vector<32x128xf32>, vector<8x128xf32> -> vector<8x128xf32>
    %151 = arith.addf %149, %150 : vector<8x128xf32>
    %152 = arith.negf %151 : vector<8x128xf32>
    %153 = math.exp %152 : vector<8x128xf32>
    %cst_49 = arith.constant 1.000000e+00 : f32
    %154 = vector.broadcast %cst_49 : f32 to vector<8x128xf32>
    %155 = arith.addf %154, %153 : vector<8x128xf32>
    %156 = arith.divf %154, %155 : vector<8x128xf32>
    %157 = vector.extract_strided_slice %156 {offsets = [0, 0], sizes = [8, 32], strides = [1, 1]} : vector<8x128xf32> to vector<8x32xf32>
    %158 = vector.extract_strided_slice %156 {offsets = [0, 32], sizes = [8, 32], strides = [1, 1]} : vector<8x128xf32> to vector<8x32xf32>
    %159 = vector.extract_strided_slice %156 {offsets = [0, 96], sizes = [8, 32], strides = [1, 1]} : vector<8x128xf32> to vector<8x32xf32>
    %160 = vector.extract_strided_slice %151 {offsets = [0, 64], sizes = [8, 32], strides = [1, 1]} : vector<8x128xf32> to vector<8x32xf32>
    %161 = math.tanh %160 : vector<8x32xf32>
    %162 = arith.mulf %158, %145 : vector<8x32xf32>
    %163 = arith.mulf %157, %161 : vector<8x32xf32>
    %164 = arith.addf %162, %163 : vector<8x32xf32>
    %165 = math.tanh %164 : vector<8x32xf32>
    %166 = arith.mulf %159, %165 : vector<8x32xf32>
    %167 = tpu.concatenate %109, %128, %147, %166 in 1 : vector<8x32xf32>, vector<8x32xf32>, vector<8x32xf32>, vector<8x32xf32> -> vector<8x128xf32>
    %c0_50 = arith.constant 0 : index
    %c128 = arith.constant 128 : index
    %168 = vector.load %arg7[%c0_50, %c128] : memref<8x256xf32, #tpu.memory_space<vmem>>, vector<8x128xf32>
    tpu.vector_store %arg7[%c0_50, %c128], %167 {strides = array<i32>} : memref<8x256xf32, #tpu.memory_space<vmem>>, vector<8x128xf32>,
    %c0_51 = arith.constant 0 : index
    %c0_52 = arith.constant 0 : index
    %169 = vector.load %arg8[%c0_51, %c0_52] : memref<8x32xf32, #tpu.memory_space<vmem>>, vector<8x32xf32>
    tpu.vector_store %arg8[%c0_51, %c0_52], %164 {strides = array<i32>} : memref<8x32xf32, #tpu.memory_space<vmem>>, vector<8x32xf32>,
    return
  }
  func.func @transform_0(%arg0: i32) -> (i32, i32) {
    %c0_i32 = arith.constant 0 : i32
    %c0_i32_0 = arith.constant 0 : i32
    %c0_i32_1 = arith.constant 0 : i32
    return %c0_i32, %c0_i32_0 : i32, i32
  }
  func.func @transform_1(%arg0: i32) -> (i32, i32) {
    %c0_i32 = arith.constant 0 : i32
    %c0_i32_0 = arith.constant 0 : i32
    %c0_i32_1 = arith.constant 0 : i32
    return %c0_i32, %c0_i32_0 : i32, i32
  }
  func.func @transform_2(%arg0: i32) -> (i32, i32) {
    %c0_i32 = arith.constant 0 : i32
    %c0_i32_0 = arith.constant 0 : i32
    %c0_i32_1 = arith.constant 0 : i32
    return %c0_i32, %c0_i32_0 : i32, i32
  }
  func.func @transform_3(%arg0: i32) -> (i32, i32) {
    %c0_i32 = arith.constant 0 : i32
    %c0_i32_0 = arith.constant 0 : i32
    %c0_i32_1 = arith.constant 0 : i32
    return %c0_i32, %c0_i32_0 : i32, i32
  }
  func.func @transform_4(%arg0: i32) -> (i32, i32) {
    %c0_i32 = arith.constant 0 : i32
    %c0_i32_0 = arith.constant 0 : i32
    %c0_i32_1 = arith.constant 0 : i32
    return %c0_i32, %c0_i32_0 : i32, i32
  }
  func.func @transform_5(%arg0: i32) -> (i32, i32) {
    %c0_i32 = arith.constant 0 : i32
    %c0_i32_0 = arith.constant 0 : i32
    %c0_i32_1 = arith.constant 0 : i32
    return %c0_i32, %c0_i32_0 : i32, i32
  }
  func.func @transform_6(%arg0: i32) -> (i32, i32) {
    %c0_i32 = arith.constant 0 : i32
    %c0_i32_0 = arith.constant 0 : i32
    %c0_i32_1 = arith.constant 0 : i32
    return %c0_i32, %c0_i32_0 : i32, i32
  }
  func.func @transform_7(%arg0: i32) -> (i32, i32) {
    %c0_i32 = arith.constant 0 : i32
    %c0_i32_0 = arith.constant 0 : i32
    %c0_i32_1 = arith.constant 0 : i32
    return %c0_i32, %c0_i32_0 : i32, i32
  }
}

</mosaic_0001>

<bundles_post_ra>
// kernel: tpu_custom_call.1
= control target key start
LH: loop header
LB: loop body
LE: loop exit
PB: predicated region body
PF: predicated region fallthrough
CT: control target
= control target key end

     0   :  { %13 = vsyncpa [#allocation4], 0  ;;  %vm41_vm0 = vcmask 130048   ;;  %s1174_s0 = inlined_call_operand.vmem [shape: f32[64,16], index: 0, kind: input, shape index: {}]   ;;  %s1175_s1 = inlined_call_operand.vmem [shape: f32[16,32], index: 1, kind: input, shape index: {}]   ;;  %s1176_s2 = inlined_call_operand.vmem [shape: f32[1,32], index: 2, kind: input, shape index: {}]   ;;  %s1177_s3 = inlined_call_operand.vmem [shape: f32[32,128], index: 3, kind: input, shape index: {}]   ;;  %s1178_s4 = inlined_call_operand.vmem [shape: f32[32,128], index: 4, kind: input, shape index: {}]   ;;  %s1179_s5 = inlined_call_operand.vmem [shape: f32[1,128], index: 5, kind: input, shape index: {}]   ;;  %s1180_s6 = inlined_call_operand.hbm [shape: f32[8,256], index: 6, kind: output, shape index: {0}]   ;;  %s1181_s7 = inlined_call_operand.hbm [shape: f32[8,32], index: 7, kind: output, shape index: {1}]  }
   0x1   :  { %v36_v0 = vld [vmem:[%s1175_s1 + $0x8] sm:$0xff]  ;;  %v35_v1 = vld [vmem:[%s1175_s1] sm:$0xff]  ;;  %v110_v3 = vld [vmem:[%s1177_s3 + $0x18] sm:$0xff] }
   0x2   :  { %v27_v2 = vld [vmem:[%s1174_s0] sm:$0xff]  ;;  %80 = vmatpush.msra.mxu0 %v36_v0  ;;  %v109_v4 = vld [vmem:[%s1177_s3 + $0x10] sm:$0xff]  ;;  %778 = vmatpush.msra.mxu2 %v36_v0 }
   0x3   :  { %152 = vmatpush.msra.mxu1 %v110_v3  ;;  %780 = vmatpush.msra.mxu3 %v110_v3 }
   0x4   :  { %14 = vsyncpa [#allocation6], 0  ;;  %81 = vmatpush.msra.mxu0 %v35_v1  ;;  %779 = vmatpush.msra.mxu2 %v35_v1  ;;  %v108_v5 = vld [vmem:[%s1177_s3 + $0x8] sm:$0xff]  ;;  %v107_v6 = vld [vmem:[%s1177_s3] sm:$0xff]  ;;  %vm115_vm1 = vcmask 261120   ;;  %s907_s3 = smov 64  }
   0x5   :  { %747 = vmatmul.msk.f32.vlgmr.msra.gmra.mxu0 %vm41_vm0, %v27_v2  ;;  %153 = vmatpush.msra.mxu1 %v109_v4  ;;  %v977_v7 = vld [vmem:[%s1176_s2] ss:$0 sm:$0xff]  ;;  %s908_s2 = smov 32   ;;  %v28_v29 = vld [vmem:[%s1174_s0 + $0x8] sm:$0xff]  ;;  %v33_v34 = vld [vmem:[%s1174_s0 + $0x30] sm:$0xff]  ;;  %s910_s14 = smov [#allocation5]  }
   0x6   :  { %781 = vmatpush.msra.mxu3 %v109_v4  ;;  %v984_v10 = vld [vmem:[%s1179_s5] ss:$0 sm:$0xff]  ;;  %v1003_v35 = vld [vmem:[%s1178_s4 + $0x18] sm:$0xff]  ;;  %753 = vmatmul.msk.f32.vlgmr.msra.gmra.mxu2 %vm41_vm0, %v33_v34  ;;  %v1009_v36 = vld [vmem:[%s1178_s4 + $0x10] sm:$0xff]  ;;  %s731_s15 = sshll.u32 %s910_s14, 4  ;;  %s911_s5 = smov [#allocation3]   ;;  %s732_s15 = int_to_ptr.vmem [resolvable:$true] %s731_s15 }
   0x7   :  { %154 = vmatpush.msra.mxu1 %v108_v5  ;;  %250 = vmatpush.msrb.mxu2 %v1003_v35  ;;  %v1016_v37 = vld [vmem:[%s1178_s4 + $0x8] sm:$0xff]  ;;  %v1023_v38 = vld [vmem:[%s1178_s4] sm:$0xff]  ;;  %v34_v39 = vld [vmem:[%s1174_s0 + $0x38] sm:$0xff]  ;;  %s720_s18 = sshll.u32 %s911_s5, 4  ;;  %s722_s20 = sshll.u32 %s1180_s6, 4  ;;  %s721_s18 = int_to_ptr.vmem [resolvable:$true] %s720_s18  ;;  %s723_s20 = int_to_ptr.hbm [resolvable:$true] %s722_s20 }
   0x8   :  { %782 = vmatpush.msra.mxu3 %v108_v5  ;;  %v29_v5 = vld [vmem:[%s1174_s0 + $0x10] sm:$0xff] }
   0x9   :  { %155 = vmatpush.msra.mxu1 %v107_v6  ;;  %251 = vmatpush.msrb.mxu2 %v1009_v36 }
   0xa   :  { %783 = vmatpush.msra.mxu3 %v107_v6 }
   0xb   :  { %252 = vmatpush.msrb.mxu2 %v1016_v37 }
   0xc   :  { %315 = vmatpush.msrb.mxu3 %v1003_v35 }
   0xd   :  { %748 = vmatmul.msk.f32.gmra.mxu0 %vm41_vm0, %v28_v29  ;;  %253 = vmatpush.msrb.mxu2 %v1023_v38 }
   0xe   :  { %316 = vmatpush.msrb.mxu3 %v1009_v36  ;;  %754 = vmatmul.msk.f32.gmra.mxu2 %vm41_vm0, %v34_v39 }
   0xf   :  { %380 = vmatpush.msra.mxu2 %v1003_v35 }
  0x10   :  { %317 = vmatpush.msrb.mxu3 %v1016_v37 }
  0x11   :  { %381 = vmatpush.msra.mxu2 %v1009_v36 }
  0x12   :  { %318 = vmatpush.msrb.mxu3 %v1023_v38 }
  0x13   :  { %382 = vmatpush.msra.mxu2 %v1016_v37 }
  0x15   :  { %383 = vmatpush.msra.mxu2 %v1023_v38  ;;  %749 = vmatmul.msk.f32.gmra.mxu0 %vm41_vm0, %v29_v5 }
  0x82   :  { %v83_v8 = vpop.f32.mrf.mxu0 }
  0x83   :  { %v84_v9 = vadd.f32 %v977_v7, %v83_v8 }
  0x85   :  { %755 = vmatmul.msk.f32.vlgmr.msra.gmra.mxu1 %vm115_vm1, %v84_v9 }
  0x89   :  { %v101_v44 = vpop.f32.mrf.mxu2 }
  0x8a   :  { %v86_v42 = vpop.f32.mrf.mxu0  ;;  %v102_v45 = vadd.f32 %v977_v7, %v101_v44 }
  0x8b   :  { %v87_v43 = vadd.f32 %v977_v7, %v86_v42 }
  0x8c   :  { %761 = vmatmul.msk.f32.vlgmr.msra.gmra.mxu3 %vm115_vm1, %v102_v45 }
  0x8d   :  { %756 = vmatmul.msk.f32.gmra.mxu1 %vm115_vm1, %v87_v43  ;;  %458 = vmatpush.msra.mxu3 %v1003_v35  ;;  %v30_v43 = vld [vmem:[%s1174_s0 + $0x18] sm:$0xff] }
  0x8e   :  { %750 = vmatmul.msk.f32.gmra.mxu0 %vm41_vm0, %v30_v43 }
  0x8f   :  { %459 = vmatpush.msra.mxu3 %v1009_v36 }
  0x91   :  { %v104_v46 = vpop.f32.mrf.mxu2  ;;  %460 = vmatpush.msra.mxu3 %v1016_v37 }
  0x92   :  { %v105_v47 = vadd.f32 %v977_v7, %v104_v46 }
  0x93   :  { %461 = vmatpush.msra.mxu3 %v1023_v38 }
  0x94   :  { %762 = vmatmul.msk.f32.gmra.mxu3 %vm115_vm1, %v105_v47 }
 0x102   :  { %v157_v11 = vpop.f32.mrf.mxu1 }
 0x103   :  { %v158_v12 = vadd.f32 %v984_v10, %v157_v11 }
 0x105   :  { %791 = vtanh.f32 %v158_v12  ;;  %v763_v14 = vmul.f32 -1.442695, %v158_v12 }
 0x107   :  { %793 = vpow2.f32 %v763_v14  ;;  %v89_v14 = vpop.f32.mrf.mxu0 }
 0x10a   :  { %v160_v49 = vpop.f32.mrf.mxu1 }
 0x10b   :  { %v792_v13 = vpop.eup %791  ;;  %v161_v50 = vadd.f32 %v984_v10, %v160_v49 }
 0x10c   :  { %216 = vrot.lane.b32.xlu0 %v792_v13, %s907_s3 }
 0x10d   :  { %v794_v15 = vpop.eup %793 }
 0x10e   :  { %v197_v16 = vadd.f32 1.0, %v794_v15  ;;  %v90_v15 = vadd.f32 %v977_v7, %v89_v14 }
 0x110   :  { %795 = vrcp.f32 %v197_v16  ;;  %v209_v22 = vand.u32 2147483648, %v197_v16  ;;  %vm203_vm3 = vweird.f32 %v197_v16  ;;  %v207_v23 = vand.u32 2147483647, %v197_v16  ;;  %757 = vmatmul.msk.f32.gmra.mxu1 %vm115_vm1, %v90_v15 }
 0x112   :  { %v210_v25 = vor.u32 1.1754944e-38, %v209_v22  ;;  %vm208_vm5 = vcmp.eq.f32.partialorder %v207_v23, 8.507059e+37 }
 0x116   :  { %v796_v17 = vpop.eup %795 }
 0x117   :  { %v199_v18 = vmul.f32 %v796_v17, %v197_v16  ;;  %vm204_vm2 = vweird.f32 %v796_v17 }
 0x118   :  { %vm205_vm4 = vmor %vm203_vm3, %vm204_vm2 }
 0x119   :  { %v200_v19 = vsub.f32 1.0, %v199_v18 }
 0x11b   :  { %v201_v20 = vmul.f32 %v796_v17, %v200_v19 }
 0x11d   :  { %v202_v21 = vadd.f32 %v796_v17, %v201_v20 }
 0x11f   :  { %v206_v24 = vsel %vm205_vm4, %v796_v17, %v202_v21  ;;  %v1076_v17 = vpop.f32.mrf.mxu3 }
 0x120   :  { %v211_v27 = vsel %vm208_vm5, %v210_v25, %v206_v24 }
 0x121   :  { %v214_v30 = vmul.f32 0.0, %v211_v27 }
 0x127   :  { %v1078_v18 = vpop.f32.mrf.mxu3 }
 0x17e   :  { %v217_v26 = vpop.permute.xlu0 %216 }
 0x17f   :  { %v219_v28 = vmul.f32 %v217_v26, %v211_v27 }
 0x181   :  { %221 = vrot.lane.b32.xlu0 %v219_v28, %s908_s2 }
 0x18d   :  { %v163_v19 = vpop.f32.mrf.mxu1 }
 0x18e   :  { %v164_v20 = vadd.f32 %v984_v10, %v163_v19 }
 0x1f3   :  { %v222_v31 = vpop.permute.xlu0 %221 }
 0x1f4   :  { %v993_v32 = vadd.f32 %v222_v31, %v214_v30 }
 0x1f6   :  { %797 = vtanh.f32 %v993_v32 }
 0x1fc   :  { %v798_v33 = vpop.eup %797 }
 0x1fd   :  { %227 = vrot.lane.b32.xlu1 %v798_v33, %s907_s3 }
 0x26f   :  { %v228_v40 = vpop.permute.xlu1 %227 }
 0x270   :  { %v230_v41 = vmul.f32 %v228_v40, %v211_v27 }
 0x272   :  { %234 = vrot.lane.b32.xlu1 %v230_v41, %s908_s2 }
 0x2e4   :  { %v1048_v48 = vpop.permute.xlu1 %234 }
 0x2e5   :  { %764 = vmatmul.msk.f32.vlgmr.msrb.gmra.mxu2 %vm115_vm1, %v1048_v48 }
 0x2e6   :  { %523 = vmatpush.msrb.mxu2 %v1003_v35 }
 0x2e8   :  { %524 = vmatpush.msrb.mxu2 %v1009_v36 }
 0x2ea   :  { %525 = vmatpush.msrb.mxu2 %v1016_v37 }
 0x2ec   :  { %526 = vmatpush.msrb.mxu2 %v1023_v38 }
 0x368   :  { %v255_v51 = vpop.f32.mrf.mxu2 }
 0x369   :  { %v258_v52 = vadd.f32 %v255_v51, %v161_v50  ;;  %v92_v51 = vpop.f32.mrf.mxu0 }
 0x36b   :  { %799 = vtanh.f32 %v258_v52  ;;  %v765_v54 = vmul.f32 -1.442695, %v258_v52  ;;  %v93_v52 = vadd.f32 %v977_v7, %v92_v51 }
 0x36d   :  { %801 = vpow2.f32 %v765_v54  ;;  %758 = vmatmul.msk.f32.gmra.mxu1 %vm115_vm1, %v93_v52 }
 0x371   :  { %v800_v53 = vpop.eup %799 }
 0x372   :  { %281 = vrot.lane.b32.xlu2 %v800_v53, %s907_s3 }
 0x373   :  { %v802_v55 = vpop.eup %801 }
 0x374   :  { %v262_v56 = vadd.f32 1.0, %v802_v55 }
 0x376   :  { %803 = vrcp.f32 %v262_v56  ;;  %v274_v62 = vand.u32 2147483648, %v262_v56  ;;  %vm268_vm7 = vweird.f32 %v262_v56  ;;  %v272_v63 = vand.u32 2147483647, %v262_v56 }
 0x378   :  { %v275_v1 = vor.u32 1.1754944e-38, %v274_v62  ;;  %vm273_vm9 = vcmp.eq.f32.partialorder %v272_v63, 8.507059e+37 }
 0x37c   :  { %v804_v57 = vpop.eup %803 }
 0x37d   :  { %v264_v58 = vmul.f32 %v804_v57, %v262_v56  ;;  %vm269_vm6 = vweird.f32 %v804_v57 }
 0x37e   :  { %vm270_vm8 = vmor %vm268_vm7, %vm269_vm6 }
 0x37f   :  { %v265_v59 = vsub.f32 1.0, %v264_v58 }
 0x381   :  { %v266_v60 = vmul.f32 %v804_v57, %v265_v59 }
 0x383   :  { %v267_v61 = vadd.f32 %v804_v57, %v266_v60 }
 0x385   :  { %v271_v0 = vsel %vm270_vm8, %v804_v57, %v267_v61 }
 0x386   :  { %v276_v3 = vsel %vm273_vm9, %v275_v1, %v271_v0 }
 0x387   :  { %v279_v6 = vmul.f32 %v276_v3, %v993_v32 }
 0x3cc   :  { %v282_v2 = vpop.permute.xlu2 %281 }
 0x3cd   :  { %v284_v4 = vmul.f32 %v282_v2, %v276_v3 }
 0x3cf   :  { %286 = vrot.lane.b32.xlu2 %v284_v4, %s908_s2 }
 0x3ea   :  { %v166_v54 = vpop.f32.mrf.mxu1 }
 0x3eb   :  { %v167_v55 = vadd.f32 %v984_v10, %v166_v54 }
 0x429   :  { %v287_v8 = vpop.permute.xlu2 %286 }
 0x42a   :  { %v289_v9 = vadd.f32 %v287_v8, %v279_v6  ;;  %v31_v6 = vld [vmem:[%s1174_s0 + $0x20] sm:$0xff] }
 0x42b   :  { %751 = vmatmul.msk.f32.gmra.mxu0 %vm41_vm0, %v31_v6 }
 0x42c   :  { %805 = vtanh.f32 %v289_v9 }
 0x432   :  { %v806_v11 = vpop.eup %805 }
 0x433   :  { %292 = vrot.lane.b32.xlu0 %v806_v11, %s907_s3 }
 0x4a5   :  { %v293_v12 = vpop.permute.xlu0 %292 }
 0x4a6   :  { %v1065_v13 = vmul.f32 %v293_v12, %v276_v3 }
 0x4a8   :  { %299 = vrot.lane.b32.xlu1 %v1065_v13, %s908_s2 }
 0x51a   :  { %v300_v16 = vpop.permute.xlu1 %299 }
 0x51b   :  { %766 = vmatmul.msk.f32.vlgmr.msrb.gmra.mxu3 %vm115_vm1, %v300_v16  ;;  %v95_v16 = vpop.f32.mrf.mxu0 }
 0x51c   :  { %588 = vmatpush.msrb.mxu3 %v1003_v35  ;;  %v96_v19 = vadd.f32 %v977_v7, %v95_v16 }
 0x51e   :  { %589 = vmatpush.msrb.mxu3 %v1009_v36  ;;  %759 = vmatmul.msk.f32.gmra.mxu1 %vm115_vm1, %v96_v19 }
 0x520   :  { %590 = vmatpush.msrb.mxu3 %v1016_v37 }
 0x522   :  { %591 = vmatpush.msrb.mxu3 %v1023_v38 }
 0x59e   :  { %v320_v21 = vpop.f32.mrf.mxu3 }
 0x59f   :  { %v323_v22 = vadd.f32 %v320_v21, %v164_v20  ;;  %v169_v21 = vpop.f32.mrf.mxu1 }
 0x5a1   :  { %807 = vtanh.f32 %v323_v22  ;;  %v767_v24 = vmul.f32 -1.442695, %v323_v22  ;;  %v170_v22 = vadd.f32 %v984_v10, %v169_v21  ;;  %v176_v21 = vadd.f32 %v984_v10, %v1076_v17 }
 0x5a3   :  { %809 = vpow2.f32 %v767_v24 }
 0x5a7   :  { %v808_v23 = vpop.eup %807 }
 0x5a8   :  { %346 = vrot.lane.b32.xlu2 %v808_v23, %s907_s3 }
 0x5a9   :  { %v810_v25 = vpop.eup %809 }
 0x5aa   :  { %v327_v26 = vadd.f32 1.0, %v810_v25 }
 0x5ac   :  { %811 = vrcp.f32 %v327_v26  ;;  %v339_v32 = vand.u32 2147483648, %v327_v26  ;;  %vm333_vm11 = vweird.f32 %v327_v26  ;;  %v337_v33 = vand.u32 2147483647, %v327_v26 }
 0x5ae   :  { %v340_v39 = vor.u32 1.1754944e-38, %v339_v32  ;;  %vm338_vm13 = vcmp.eq.f32.partialorder %v337_v33, 8.507059e+37 }
 0x5b2   :  { %v812_v27 = vpop.eup %811 }
 0x5b3   :  { %v329_v28 = vmul.f32 %v812_v27, %v327_v26  ;;  %vm334_vm10 = vweird.f32 %v812_v27 }
 0x5b4   :  { %vm335_vm12 = vmor %vm333_vm11, %vm334_vm10 }
 0x5b5   :  { %v330_v29 = vsub.f32 1.0, %v329_v28 }
 0x5b7   :  { %v331_v30 = vmul.f32 %v812_v27, %v330_v29 }
 0x5b9   :  { %v332_v31 = vadd.f32 %v812_v27, %v331_v30 }
 0x5bb   :  { %v336_v34 = vsel %vm335_vm12, %v812_v27, %v332_v31 }
 0x5bc   :  { %v341_v41 = vsel %vm338_vm13, %v340_v39, %v336_v34 }
 0x5bd   :  { %v344_v44 = vmul.f32 %v341_v41, %v289_v9 }
 0x602   :  { %v347_v40 = vpop.permute.xlu2 %346 }
 0x603   :  { %v349_v42 = vmul.f32 %v347_v40, %v341_v41 }
 0x605   :  { %351 = vrot.lane.b32.xlu0 %v349_v42, %s908_s2 }
 0x677   :  { %v352_v45 = vpop.permute.xlu0 %351 }
 0x678   :  { %v354_v46 = vadd.f32 %v352_v45, %v344_v44  ;;  %v32_v45 = vld [vmem:[%s1174_s0 + $0x28] sm:$0xff]  ;;  %s909_s0 = smov 96  }
 0x679   :  { %752 = vmatmul.msk.f32.gmra.mxu0 %vm41_vm0, %v32_v45 }
 0x67a   :  { %813 = vtanh.f32 %v354_v46 }
 0x680   :  { %v814_v47 = vpop.eup %813 }
 0x681   :  { %357 = vrot.lane.b32.xlu1 %v814_v47, %s907_s3 }
 0x6f3   :  { %v358_v49 = vpop.permute.xlu1 %357 }
 0x6f4   :  { %v1088_v50 = vmul.f32 %v358_v49, %v341_v41 }
 0x6f6   :  { %364 = vrot.lane.b32.xlu2 %v1088_v50, %s908_s2  ;;  %v98_v54 = vpop.f32.mrf.mxu0 }
 0x750   :  { %v365_v53 = vpop.permute.xlu2 %364 }
 0x751   :  { %768 = vmatmul.msk.f32.vlgmr.msra.gmra.mxu2 %vm115_vm1, %v365_v53 }
 0x752   :  { %653 = vmatpush.msra.mxu2 %v1003_v35 }
 0x754   :  { %654 = vmatpush.msra.mxu2 %v1009_v36 }
 0x756   :  { %655 = vmatpush.msra.mxu2 %v1016_v37 }
 0x758   :  { %656 = vmatpush.msra.mxu2 %v1023_v38 }
 0x7d4   :  { %v385_v56 = vpop.f32.mrf.mxu2 }
 0x7d5   :  { %v388_v57 = vadd.f32 %v385_v56, %v167_v55  ;;  %v99_v55 = vadd.f32 %v977_v7, %v98_v54 }
 0x7d7   :  { %815 = vtanh.f32 %v388_v57  ;;  %v769_v59 = vmul.f32 -1.442695, %v388_v57  ;;  %760 = vmatmul.msk.f32.gmra.mxu1 %vm115_vm1, %v99_v55 }
 0x7d9   :  { %817 = vpow2.f32 %v769_v59 }
 0x7dd   :  { %v816_v58 = vpop.eup %815 }
 0x7de   :  { %411 = vrot.lane.b32.xlu0 %v816_v58, %s907_s3 }
 0x7df   :  { %v818_v60 = vpop.eup %817 }
 0x7e0   :  { %v392_v61 = vadd.f32 1.0, %v818_v60 }
 0x7e2   :  { %819 = vrcp.f32 %v392_v61  ;;  %v404_v38 = vand.u32 2147483648, %v392_v61  ;;  %vm398_vm15 = vweird.f32 %v392_v61  ;;  %v402_v0 = vand.u32 2147483647, %v392_v61 }
 0x7e4   :  { %v405_v2 = vor.u32 1.1754944e-38, %v404_v38  ;;  %vm403_vm3 = vcmp.eq.f32.partialorder %v402_v0, 8.507059e+37 }
 0x7e8   :  { %v820_v35 = vpop.eup %819 }
 0x7e9   :  { %v394_v36 = vmul.f32 %v820_v35, %v392_v61  ;;  %vm399_vm14 = vweird.f32 %v820_v35 }
 0x7ea   :  { %vm400_vm2 = vmor %vm398_vm15, %vm399_vm14  ;;  %vm434_vm15 = vcmask 523264  }
 0x7eb   :  { %v395_v62 = vsub.f32 1.0, %v394_v36 }
 0x7ed   :  { %v396_v37 = vmul.f32 %v820_v35, %v395_v62 }
 0x7ef   :  { %v397_v63 = vadd.f32 %v820_v35, %v396_v37 }
 0x7f1   :  { %v401_v1 = vsel %vm400_vm2, %v820_v35, %v397_v63  ;;  %vm436_vm2 = vcmask 785408  }
 0x7f2   :  { %v406_v4 = vsel %vm403_vm3, %v405_v2, %v401_v1 }
 0x7f3   :  { %v409_v8 = vmul.f32 %v406_v4, %v354_v46 }
 0x850   :  { %v412_v3 = vpop.permute.xlu0 %411 }
 0x851   :  { %v414_v5 = vmul.f32 %v412_v3, %v406_v4 }
 0x853   :  { %416 = vrot.lane.b32.xlu1 %v414_v5, %s908_s2 }
 0x854   :  { %v172_v57 = vpop.f32.mrf.mxu1 }
 0x855   :  { %v173_v58 = vadd.f32 %v984_v10, %v172_v57 }
 0x8c5   :  { %v417_v9 = vpop.permute.xlu1 %416 }
 0x8c6   :  { %v419_v11 = vadd.f32 %v417_v9, %v409_v8 }
 0x8c8   :  { %821 = vtanh.f32 %v419_v11 }
 0x8ce   :  { %v822_v12 = vpop.eup %821 }
 0x8cf   :  { %422 = vrot.lane.b32.xlu2 %v822_v12, %s907_s3 }
 0x929   :  { %v423_v14 = vpop.permute.xlu2 %422 }
 0x92a   :  { %v1107_v15 = vmul.f32 %v423_v14, %v406_v4 }
 0x92c   :  { %442 = vrot.lane.b32.xlu0 %v1107_v15, %s908_s2 }
 0x99e   :  { %v443_v20 = vpop.permute.xlu0 %442 }
 0x99f   :  { %770 = vmatmul.msk.f32.vlgmr.msra.gmra.mxu3 %vm115_vm1, %v443_v20 }
 0xa22   :  { %v463_v23 = vpop.f32.mrf.mxu3 }
 0xa23   :  { %v466_v24 = vadd.f32 %v463_v23, %v170_v22 }
 0xa25   :  { %823 = vtanh.f32 %v466_v24  ;;  %v771_v26 = vmul.f32 -1.442695, %v466_v24 }
 0xa27   :  { %825 = vpow2.f32 %v771_v26 }
 0xa2b   :  { %v824_v25 = vpop.eup %823 }
 0xa2c   :  { %489 = vrot.lane.b32.xlu1 %v824_v25, %s907_s3 }
 0xa2d   :  { %v826_v27 = vpop.eup %825 }
 0xa2e   :  { %v470_v28 = vadd.f32 1.0, %v826_v27 }
 0xa30   :  { %827 = vrcp.f32 %v470_v28  ;;  %v482_v34 = vand.u32 2147483648, %v470_v28  ;;  %vm476_vm5 = vweird.f32 %v470_v28  ;;  %v480_v39 = vand.u32 2147483647, %v470_v28 }
 0xa32   :  { %v483_v41 = vor.u32 1.1754944e-38, %v482_v34  ;;  %vm481_vm7 = vcmp.eq.f32.partialorder %v480_v39, 8.507059e+37 }
 0xa36   :  { %v828_v29 = vpop.eup %827 }
 0xa37   :  { %v472_v30 = vmul.f32 %v828_v29, %v470_v28  ;;  %vm477_vm4 = vweird.f32 %v828_v29 }
 0xa38   :  { %vm478_vm6 = vmor %vm476_vm5, %vm477_vm4 }
 0xa39   :  { %v473_v31 = vsub.f32 1.0, %v472_v30 }
 0xa3b   :  { %v474_v32 = vmul.f32 %v828_v29, %v473_v31 }
 0xa3d   :  { %v475_v33 = vadd.f32 %v828_v29, %v474_v32 }
 0xa3f   :  { %v479_v40 = vsel %vm478_vm6, %v828_v29, %v475_v33 }
 0xa40   :  { %v484_v43 = vsel %vm481_vm7, %v483_v41, %v479_v40 }
 0xa41   :  { %v487_v46 = vmul.f32 %v484_v43, %v419_v11 }
 0xa9e   :  { %v490_v42 = vpop.permute.xlu1 %489 }
 0xa9f   :  { %v492_v44 = vmul.f32 %v490_v42, %v484_v43 }
 0xaa1   :  { %494 = vrot.lane.b32.xlu2 %v492_v44, %s908_s2 }
 0xafb   :  { %v495_v47 = vpop.permute.xlu2 %494 }
 0xafc   :  { %v497_v49 = vadd.f32 %v495_v47, %v487_v46 }
 0xafe   :  { %829 = vtanh.f32 %v497_v49 }
 0xb04   :  { %v830_v51 = vpop.eup %829 }
 0xb05   :  { %500 = vrot.lane.b32.xlu0 %v830_v51, %s907_s3 }
 0xb77   :  { %v501_v52 = vpop.permute.xlu0 %500 }
 0xb78   :  { %v503_v53 = vmul.f32 %v501_v52, %v484_v43 }
 0xb7a   :  { %507 = vrot.lane.b32.xlu1 %v503_v53, %s908_s2 }
 0xbec   :  { %v1125_v56 = vpop.permute.xlu1 %507 }
 0xbed   :  { %772 = vmatmul.msk.f32.vlgmr.msrb.gmra.mxu2 %vm115_vm1, %v1125_v56 }
 0xc70   :  { %v528_v59 = vpop.f32.mrf.mxu2 }
 0xc71   :  { %v531_v60 = vadd.f32 %v528_v59, %v173_v58 }
 0xc73   :  { %831 = vtanh.f32 %v531_v60  ;;  %v773_v35 = vmul.f32 -1.442695, %v531_v60 }
 0xc75   :  { %833 = vpow2.f32 %v773_v35 }
 0xc79   :  { %v832_v61 = vpop.eup %831 }
 0xc7a   :  { %554 = vrot.lane.b32.xlu2 %v832_v61, %s907_s3 }
 0xc7b   :  { %v834_v36 = vpop.eup %833 }
 0xc7c   :  { %v535_v7 = vadd.f32 1.0, %v834_v36 }
 0xc7e   :  { %835 = vrcp.f32 %v535_v7  ;;  %v547_v1 = vand.u32 2147483648, %v535_v7  ;;  %vm541_vm8 = vweird.f32 %v535_v7  ;;  %v545_v2 = vand.u32 2147483647, %v535_v7 }
 0xc80   :  { %v548_v4 = vor.u32 1.1754944e-38, %v547_v1  ;;  %vm546_vm10 = vcmp.eq.f32.partialorder %v545_v2, 8.507059e+37 }
 0xc84   :  { %v836_v62 = vpop.eup %835 }
 0xc85   :  { %v537_v37 = vmul.f32 %v836_v62, %v535_v7  ;;  %vm542_vm0 = vweird.f32 %v836_v62 }
 0xc86   :  { %vm543_vm9 = vmor %vm541_vm8, %vm542_vm0 }
 0xc87   :  { %v538_v63 = vsub.f32 1.0, %v537_v37 }
 0xc89   :  { %v539_v38 = vmul.f32 %v836_v62, %v538_v63 }
 0xc8b   :  { %v540_v0 = vadd.f32 %v836_v62, %v539_v38 }
 0xc8d   :  { %v544_v3 = vsel %vm543_vm9, %v836_v62, %v540_v0 }
 0xc8e   :  { %v549_v6 = vsel %vm546_vm10, %v548_v4, %v544_v3 }
 0xc8f   :  { %v552_v9 = vmul.f32 %v549_v6, %v497_v49 }
 0xcd4   :  { %v555_v5 = vpop.permute.xlu2 %554 }
 0xcd5   :  { %v557_v8 = vmul.f32 %v555_v5, %v549_v6 }
 0xcd7   :  { %559 = vrot.lane.b32.xlu0 %v557_v8, %s908_s2 }
 0xd49   :  { %v560_v11 = vpop.permute.xlu0 %559 }
 0xd4a   :  { %v562_v12 = vadd.f32 %v560_v11, %v552_v9 }
 0xd4c   :  { %837 = vtanh.f32 %v562_v12 }
 0xd52   :  { %v838_v14 = vpop.eup %837 }
 0xd53   :  { %565 = vrot.lane.b32.xlu1 %v838_v14, %s907_s3 }
 0xdc5   :  { %v566_v16 = vpop.permute.xlu1 %565 }
 0xdc6   :  { %v1133_v19 = vmul.f32 %v566_v16, %v549_v6 }
 0xdc8   :  { %572 = vrot.lane.b32.xlu2 %v1133_v19, %s908_s2 }
 0xe22   :  { %v573_v20 = vpop.permute.xlu2 %572 }
 0xe23   :  { %774 = vmatmul.msk.f32.vlgmr.msrb.gmra.mxu3 %vm115_vm1, %v573_v20 }
 0xea6   :  { %v593_v22 = vpop.f32.mrf.mxu3 }
 0xea7   :  { %v596_v23 = vadd.f32 %v593_v22, %v176_v21 }
 0xea9   :  { %839 = vtanh.f32 %v596_v23  ;;  %v775_v25 = vmul.f32 -1.442695, %v596_v23 }
 0xeab   :  { %841 = vpow2.f32 %v775_v25 }
 0xeaf   :  { %v840_v24 = vpop.eup %839 }
 0xeb0   :  { %619 = vrot.lane.b32.xlu0 %v840_v24, %s907_s3 }
 0xeb1   :  { %v842_v26 = vpop.eup %841 }
 0xeb2   :  { %v600_v27 = vadd.f32 1.0, %v842_v26 }
 0xeb4   :  { %843 = vrcp.f32 %v600_v27  ;;  %v612_v33 = vand.u32 2147483648, %v600_v27  ;;  %vm606_vm12 = vweird.f32 %v600_v27  ;;  %v610_v17 = vand.u32 2147483647, %v600_v27 }
 0xeb6   :  { %v613_v39 = vor.u32 1.1754944e-38, %v612_v33  ;;  %vm611_vm14 = vcmp.eq.f32.partialorder %v610_v17, 8.507059e+37 }
 0xeba   :  { %v844_v28 = vpop.eup %843 }
 0xebb   :  { %v602_v29 = vmul.f32 %v844_v28, %v600_v27  ;;  %vm607_vm11 = vweird.f32 %v844_v28 }
 0xebc   :  { %vm608_vm13 = vmor %vm606_vm12, %vm607_vm11 }
 0xebd   :  { %v603_v30 = vsub.f32 1.0, %v602_v29 }
 0xebf   :  { %v604_v31 = vmul.f32 %v844_v28, %v603_v30 }
 0xec1   :  { %v605_v32 = vadd.f32 %v844_v28, %v604_v31 }
 0xec3   :  { %v609_v34 = vsel %vm608_vm13, %v844_v28, %v605_v32 }
 0xec4   :  { %v614_v41 = vsel %vm611_vm14, %v613_v39, %v609_v34 }
 0xec5   :  { %v617_v43 = vmul.f32 %v614_v41, %v562_v12 }
 0xf22   :  { %v620_v40 = vpop.permute.xlu0 %619 }
 0xf23   :  { %v622_v42 = vmul.f32 %v620_v40, %v614_v41 }
 0xf25   :  { %624 = vrot.lane.b32.xlu1 %v622_v42, %s908_s2 }
 0xf97   :  { %v625_v44 = vpop.permute.xlu1 %624 }
 0xf98   :  { %v627_v45 = vadd.f32 %v625_v44, %v617_v43 }
 0xf9a   :  { %845 = vtanh.f32 %v627_v45 }
 0xfa0   :  { %v846_v46 = vpop.eup %845 }
 0xfa1   :  { %630 = vrot.lane.b32.xlu2 %v846_v46, %s907_s3 }
 0xffb   :  { %v631_v47 = vpop.permute.xlu2 %630 }
 0xffc   :  { %v633_v49 = vmul.f32 %v631_v47, %v614_v41 }
 0xffe   :  { %637 = vrot.lane.b32.xlu0 %v633_v49, %s908_s2 }
0x1006   :  { %427 = vrot.lane.b32.xlu0 %v1065_v13, %s907_s3  ;;  %v179_v13 = vadd.f32 %v984_v10, %v1078_v18 }
0x100e   :  { %430 = vrot.lane.b32.xlu0 %v1088_v50, %s909_s0 }
0x1070   :  { %v638_v51 = vpop.permute.xlu0 %637 }
0x1071   :  { %776 = vmatmul.msk.f32.vlgmr.msra.gmra.mxu2 %vm115_vm1, %v638_v51 }
0x1078   :  { %v428_v52 = vpop.permute.xlu0 %427 }
0x1079   :  { %v433_v53 = vsel %vm115_vm1, %v1048_v48, %v428_v52 }
0x1080   :  { %v431_v54 = vpop.permute.xlu0 %430 }
0x1081   :  { %v435_v55 = vsel %vm434_vm15, %v433_v53, %v431_v54 }
0x1082   :  { %v437_v57 = vsel %vm436_vm2, %v435_v55, %v1107_v15 }
0x1083   :  { %438 = vst [vmem:[#allocation3] sm:$0xff] %v437_v57 }
0x10f4   :  { %v658_v50 = vpop.f32.mrf.mxu2 }
0x10f5   :  { %v661_v58 = vadd.f32 %v658_v50, %v179_v13 }
0x10f7   :  { %847 = vtanh.f32 %v661_v58  ;;  %v777_v60 = vmul.f32 -1.442695, %v661_v58 }
0x10f9   :  { %849 = vpow2.f32 %v777_v60 }
0x10fd   :  { %v848_v59 = vpop.eup %847 }
0x10fe   :  { %684 = vrot.lane.b32.xlu1 %v848_v59, %s907_s3 }
0x10ff   :  { %v850_v61 = vpop.eup %849 }
0x1100   :  { %v665_v48 = vadd.f32 1.0, %v850_v61 }
0x1102   :  { %851 = vrcp.f32 %v665_v48  ;;  %v677_v37 = vand.u32 2147483648, %v665_v48  ;;  %vm671_vm4 = vweird.f32 %v665_v48  ;;  %v675_v10 = vand.u32 2147483647, %v665_v48 }
0x1104   :  { %v678_v63 = vor.u32 1.1754944e-38, %v677_v37  ;;  %vm676_vm6 = vcmp.eq.f32.partialorder %v675_v10, 8.507059e+37 }
0x1108   :  { %v852_v35 = vpop.eup %851 }
0x1109   :  { %v667_v36 = vmul.f32 %v852_v35, %v665_v48  ;;  %vm672_vm3 = vweird.f32 %v852_v35 }
0x110a   :  { %vm673_vm5 = vmor %vm671_vm4, %vm672_vm3 }
0x110b   :  { %v668_v7 = vsub.f32 1.0, %v667_v36 }
0x110d   :  { %v669_v62 = vmul.f32 %v852_v35, %v668_v7 }
0x110f   :  { %v670_v15 = vadd.f32 %v852_v35, %v669_v62 }
0x1111   :  { %v674_v18 = vsel %vm673_vm5, %v852_v35, %v670_v15 }
0x1112   :  { %v679_v0 = vsel %vm676_vm6, %v678_v63, %v674_v18 }
0x1113   :  { %v682_v2 = vmul.f32 %v679_v0, %v627_v45 }
0x1170   :  { %v685_v38 = vpop.permute.xlu1 %684 }
0x1171   :  { %v687_v1 = vmul.f32 %v685_v38, %v679_v0 }
0x1173   :  { %689 = vrot.lane.b32.xlu2 %v687_v1, %s908_s2  ;;  %s733_s2 = sshll.u32 %s1181_s7, 4  ;;  %s734_s2 = int_to_ptr.hbm [resolvable:$true] %s733_s2 }
0x117b   :  { %700 = vrot.lane.b32.xlu2 %v1133_v19, %s907_s3 }
0x11cd   :  { %v690_v3 = vpop.permute.xlu2 %689 }
0x11ce   :  { %v692_v4 = vadd.f32 %v690_v3, %v682_v2 }
0x11d0   :  { %853 = vtanh.f32 %v692_v4  ;;  %711 = vrot.lane.b32.xlu2 %v692_v4, %s909_s0 }
0x11d5   :  { %v701_v6 = vpop.permute.xlu2 %700 }
0x11d6   :  { %v854_v5 = vpop.eup %853  ;;  %v706_v11 = vsel %vm115_vm1, %v1125_v56, %v701_v6 }
0x11d7   :  { %695 = vrot.lane.b32.xlu1 %v854_v5, %s907_s3 }
0x11df   :  { %703 = vrot.lane.b32.xlu1 %v633_v49, %s909_s0 }
0x122a   :  { %v712_v8 = vpop.permute.xlu2 %711 }
0x122b   :  { %714 = vst.msk [vmem:[#allocation5] sm:$0xff] %vm115_vm1, %v712_v8 }
0x122c   :  { %736 = dma.vmem_to_hbm [thread:$0]  %s732_s15, 128, %s734_s2, [#allocation6]  }
0x1249   :  { %v696_v9 = vpop.permute.xlu1 %695 }
0x124a   :  { %v698_v12 = vmul.f32 %v696_v9, %v679_v0 }
0x1251   :  { %v704_v14 = vpop.permute.xlu1 %703 }
0x1252   :  { %v707_v16 = vsel %vm434_vm15, %v706_v11, %v704_v14 }
0x1253   :  { %v708_v19 = vsel %vm436_vm2, %v707_v16, %v698_v12 }
0x1254   :  { %709 = vst [vmem:[#allocation3 + $0x8] sm:$0xff] %v708_v19 }
0x1255   :  { %725 = dma.vmem_to_hbm [thread:$0]  %s721_s18, 256, %s723_s20, [#allocation4]  }
0x1256   :  { %903 = dma.done.wait [#allocation4], 256  }
0x1257   :  { %904 = vsyncadd [#allocation4], 4294967040 }
0x1258   :  { %905 = dma.done.wait [#allocation6], 128  }
0x1259   :  { %906 = vsyncadd [#allocation6], 4294967168 }
0x125a   :  { %745 = vsyncpa [#allocation4], 1 }
0x125b   :  { %746 = vsyncpa [#allocation6], 1 }

</bundles_post_ra>
